<compile_context>
chip_gen: v5e
topology: v5e:2x2
jax: 0.10.0
libtpu: 0.0.40
codegen_flags: <defaults>
</compile_context>

<pallas_src>
import jax
import jax.numpy as jnp
from jax import lax
from jax.experimental import pallas as pl
from jax.experimental.pallas import tpu as pltpu


def _round_up(x, m):
    return ((x + m - 1) // m) * m


def _pos_aware_loss_kernel(preds_ref, labels_ref, nb_labels_ref, out_ref):
    preds = preds_ref[...].astype(jnp.float32)          # (tm, C) logits
    labels = labels_ref[...]                            # (tm, 1) int32 row labels
    nb = nb_labels_ref[...]                             # (tm, K) int32 neighbor labels

    # Ndiff: #neighbors with a different label, clamped to >= 1.
    ndiff = jnp.sum((nb != labels).astype(jnp.int32), axis=1, keepdims=True)
    ndiff = jnp.maximum(ndiff, 1).astype(jnp.float32)   # (tm, 1)

    # Cross entropy with ignore_index = -1:  ce = lse - preds[label].
    m = jnp.max(preds, axis=1, keepdims=True)
    lse = jnp.log(jnp.sum(jnp.exp(preds - m), axis=1, keepdims=True)) + m
    c_iota = lax.broadcasted_iota(jnp.int32, preds.shape, 1)
    onehot = (c_iota == labels).astype(jnp.float32)     # all-zero row if label == -1
    picked = jnp.sum(onehot * preds, axis=1, keepdims=True)
    valid = (labels >= 0).astype(jnp.float32)
    ce = (lse - picked) * valid                         # (tm, 1)

    # Per-row-tile partial sum (scaled by 1/N in the wrapper).  Output is a
    # single f32 per tile, so the non-lane-dense store is negligible.
    out_ref[...] = jnp.sum(ce * ndiff, axis=0, keepdims=True).reshape(1, 1, 1)


def pos_aware_loss(preds, labels, idx, *, tm=512):
    """preds: (N, C) logits; labels: (N,) int (-1 = ignore); idx: (N, K) neighbor ids."""
    N, C = preds.shape
    K = idx.shape[1]

    preds = preds.astype(jnp.float32)
    labels = labels.astype(jnp.int32)
    idx = idx.astype(jnp.int32)

    # Gather neighbor labels once in XLA (O(N*K)); the kernel never touches
    # idx or the full label vector again.
    nb_labels = jnp.take(labels, idx, axis=0)           # (N, K)

    # Row tile: multiple of 8, capped at ~ceil(N/2) so grid_r >= 2 and the
    # "parallel" row axis actually shards across v7x's two TensorCores.
    tm = _round_up(min(tm, max(pl.cdiv(N, 2), 8)), 8)
    grid_r = pl.cdiv(N, tm)
    n_rows = grid_r * tm

    # Padding: padded rows get label -1 (ignored -> ce = 0 -> zero contribution).
    preds_p = jnp.pad(preds, ((0, n_rows - N), (0, 0)))
    labels_p = jnp.pad(labels, (0, n_rows - N),
                       constant_values=-1).reshape(n_rows, 1)
    nb_labels_p = jnp.pad(nb_labels, ((0, n_rows - N), (0, 0)))

    partial = pl.pallas_call(
        _pos_aware_loss_kernel,
        out_shape=jax.ShapeDtypeStruct((grid_r, 1, 1), jnp.float32),
        grid_spec=pltpu.PrefetchScalarGridSpec(
            num_scalar_prefetch=0,
            grid=(grid_r,),
            in_specs=[
                pl.BlockSpec((tm, C), lambda i: (i, 0)),   # logits
                pl.BlockSpec((tm, 1), lambda i: (i, 0)),   # row labels
                pl.BlockSpec((tm, K), lambda i: (i, 0)),   # neighbor labels
            ],
            out_specs=pl.BlockSpec((1, 1, 1), lambda i: (i, 0, 0)),
        ),
        compiler_params=pltpu.CompilerParams(
            dimension_semantics=("parallel",)),
    )(preds_p, labels_p, nb_labels_p)

    # Original module: wce.mean() over ALL N rows (ignored rows contribute 0).
    return jnp.sum(partial) / N


def _reference(preds, labels, idx):
    """Pure-JAX reference mirroring the PyTorch forward."""
    N, _ = preds.shape
    nb_labels = labels[idx]                                    # (N, K)
    ndiff = jnp.sum(nb_labels != labels[:, None], axis=1).astype(jnp.float32)
    ndiff = jnp.where(ndiff == 0, 1.0, ndiff)
    logp = jax.nn.log_softmax(preds, axis=1)
    valid = labels != -1
    safe_lab = jnp.where(valid, labels, 0)
    ce = -logp[jnp.arange(N), safe_lab]
    ce = jnp.where(valid, ce, 0.0)
    return jnp.mean(ce * ndiff)


if __name__ == "__main__":
    key = jax.random.PRNGKey(0)
    keys = jax.random.split(key, 8)

    # --- small case: N samples, C classes, K neighbors ---
    N, C, K = 16, 5, 4
    preds = jax.random.normal(keys[0], (N, C), dtype=jnp.float32)
    labels = jax.random.randint(keys[1], (N,), 0, C, dtype=jnp.int32)
    labels = jnp.where(jax.random.bernoulli(keys[3], 0.2, (N,)), -1, labels)
    idx = jax.random.randint(keys[2], (N, K), 0, N, dtype=jnp.int32)

    loss = pos_aware_loss(preds, labels, idx)
    jax.block_until_ready(loss)
    ref = _reference(preds, labels, idx)
    assert jnp.allclose(loss, ref, rtol=1e-5, atol=1e-6), (loss, ref)

    # --- second case: exercises row padding and multiple parallel row tiles ---
    N2, C2, K2 = 200, 5, 6
    preds2 = jax.random.normal(keys[4], (N2, C2), dtype=jnp.float32)
    labels2 = jax.random.randint(keys[5], (N2,), 0, C2, dtype=jnp.int32)
    labels2 = jnp.where(jax.random.bernoulli(keys[7], 0.2, (N2,)), -1, labels2)
    idx2 = jax.random.randint(keys[6], (N2, K2), 0, N2, dtype=jnp.int32)

    loss2 = pos_aware_loss(preds2, labels2, idx2, tm=64)   # grid_r = 4
    jax.block_until_ready(loss2)
    ref2 = _reference(preds2, labels2, idx2)
    assert jnp.allclose(loss2, ref2, rtol=1e-5, atol=1e-5), (loss2, ref2)

    print("KERNEL_OK")
</pallas_src>

<mosaic_0001>
module attributes {stable_mosaic.version = 11 : i64} {
  func.func @_pos_aware_loss_kernel(%arg0: i32, %arg1: memref<8x5xf32, #tpu.memory_space<vmem>>, %arg2: memref<8x1xi32, #tpu.memory_space<vmem>>, %arg3: memref<8x4xi32, #tpu.memory_space<vmem>>, %arg4: memref<1x1x1xf32, #tpu.memory_space<vmem>>) attributes {dimension_semantics = [#tpu.dimension_semantics<parallel>], iteration_bounds = array<i64: 2>, scalar_prefetch = 0 : i64, scratch_operands = 0 : i64, tpu.core_type = #tpu.core_type<tc>, window_params = [{transform_indices = @transform_0, window_bounds = array<i64: 8, 5>}, {transform_indices = @transform_1, window_bounds = array<i64: 8, 1>}, {transform_indices = @transform_2, window_bounds = array<i64: 8, 4>}, {transform_indices = @transform_3, window_bounds = array<i64: 1, 1, 1>}]} {
    %c0 = arith.constant 0 : index
    %c0_0 = arith.constant 0 : index
    %0 = vector.load %arg1[%c0, %c0_0] : memref<8x5xf32, #tpu.memory_space<vmem>>, vector<8x5xf32>
    %c0_1 = arith.constant 0 : index
    %c0_2 = arith.constant 0 : index
    %1 = vector.load %arg2[%c0_1, %c0_2] : memref<8x1xi32, #tpu.memory_space<vmem>>, vector<8x1xi32>
    %c0_3 = arith.constant 0 : index
    %c0_4 = arith.constant 0 : index
    %2 = vector.load %arg3[%c0_3, %c0_4] : memref<8x4xi32, #tpu.memory_space<vmem>>, vector<8x4xi32>
    %3 = vector.broadcast %1 : vector<8x1xi32> to vector<8x4xi32>
    %4 = arith.cmpi ne, %2, %3 : vector<8x4xi32>
    %5 = arith.extui %4 : vector<8x4xi1> to vector<8x4xi32>
    %cst = arith.constant dense<0> : vector<8xi32>
    %6 = vector.multi_reduction <add>, %5, %cst [1] : vector<8x4xi32> to vector<8xi32>
    %7 = vector.shape_cast %6 : vector<8xi32> to vector<8x1xi32>
    %c1_i32 = arith.constant 1 : i32
    %8 = vector.broadcast %c1_i32 : i32 to vector<8x1xi32>
    %9 = arith.maxsi %7, %8 : vector<8x1xi32>
    %10 = arith.sitofp %9 : vector<8x1xi32> to vector<8x1xf32>
    %cst_5 = arith.constant dense<0xFF800000> : vector<8xf32>
    %11 = vector.multi_reduction <maximumf>, %0, %cst_5 [1] : vector<8x5xf32> to vector<8xf32>
    %12 = vector.shape_cast %11 : vector<8xf32> to vector<8x1xf32>
    %13 = vector.broadcast %12 : vector<8x1xf32> to vector<8x5xf32>
    %14 = arith.subf %0, %13 : vector<8x5xf32>
    %15 = math.exp %14 : vector<8x5xf32>
    %cst_6 = arith.constant dense<0.000000e+00> : vector<8xf32>
    %16 = vector.multi_reduction <add>, %15, %cst_6 [1] : vector<8x5xf32> to vector<8xf32>
    %17 = vector.shape_cast %16 : vector<8xf32> to vector<8x1xf32>
    %18 = math.log %17 : vector<8x1xf32>
    %19 = arith.addf %18, %12 : vector<8x1xf32>
    %20 = tpu.iota {dimensions = array<i32: 1>} : vector<8x5xi32>
    %21 = vector.broadcast %1 : vector<8x1xi32> to vector<8x5xi32>
    %22 = arith.cmpi eq, %20, %21 : vector<8x5xi32>
    %23 = arith.extui %22 : vector<8x5xi1> to vector<8x5xi32>
    %24 = arith.sitofp %23 : vector<8x5xi32> to vector<8x5xf32>
    %25 = arith.mulf %24, %0 : vector<8x5xf32>
    %cst_7 = arith.constant dense<0.000000e+00> : vector<8xf32>
    %26 = vector.multi_reduction <add>, %25, %cst_7 [1] : vector<8x5xf32> to vector<8xf32>
    %27 = vector.shape_cast %26 : vector<8xf32> to vector<8x1xf32>
    %c0_i32 = arith.constant 0 : i32
    %28 = vector.broadcast %c0_i32 : i32 to vector<8x1xi32>
    %29 = arith.cmpi sge, %1, %28 : vector<8x1xi32>
    %30 = arith.extui %29 : vector<8x1xi1> to vector<8x1xi32>
    %31 = arith.sitofp %30 : vector<8x1xi32> to vector<8x1xf32>
    %32 = arith.subf %19, %27 : vector<8x1xf32>
    %33 = arith.mulf %32, %31 : vector<8x1xf32>
    %34 = arith.mulf %33, %10 : vector<8x1xf32>
    %cst_8 = arith.constant dense<0.000000e+00> : vector<1xf32>
    %35 = vector.multi_reduction <add>, %34, %cst_8 [0] : vector<8x1xf32> to vector<1xf32>
    %36 = vector.shape_cast %35 : vector<1xf32> to vector<1x1xf32>
    %37 = vector.shape_cast %36 : vector<1x1xf32> to vector<1x1x1xf32>
    %c0_9 = arith.constant 0 : index
    %c0_10 = arith.constant 0 : index
    %c0_11 = arith.constant 0 : index
    %38 = vector.load %arg4[%c0_9, %c0_10, %c0_11] : memref<1x1x1xf32, #tpu.memory_space<vmem>>, vector<1x1x1xf32>
    tpu.vector_store %arg4[%c0_9, %c0_10, %c0_11], %37 {strides = array<i32>} : memref<1x1x1xf32, #tpu.memory_space<vmem>>, vector<1x1x1xf32>,
    return
  }
  func.func @transform_0(%arg0: i32) -> (i32, i32) {
    %c0_i32 = arith.constant 0 : i32
    %c0_i32_0 = arith.constant 0 : i32
    return %arg0, %c0_i32 : i32, i32
  }
  func.func @transform_1(%arg0: i32) -> (i32, i32) {
    %c0_i32 = arith.constant 0 : i32
    %c0_i32_0 = arith.constant 0 : i32
    return %arg0, %c0_i32 : i32, i32
  }
  func.func @transform_2(%arg0: i32) -> (i32, i32) {
    %c0_i32 = arith.constant 0 : i32
    %c0_i32_0 = arith.constant 0 : i32
    return %arg0, %c0_i32 : i32, i32
  }
  func.func @transform_3(%arg0: i32) -> (i32, i32, i32) {
    %c0_i32 = arith.constant 0 : i32
    %c0_i32_0 = arith.constant 0 : i32
    %c0_i32_1 = arith.constant 0 : i32
    return %arg0, %c0_i32, %c0_i32_0 : i32, i32, i32
  }
}

</mosaic_0001>

<bundles_post_ra>
// kernel: tpu_custom_call.1
= control target key start
LH: loop header
LB: loop body
LE: loop exit
PB: predicated region body
PF: predicated region fallthrough
CT: control target
= control target key end

     0   :  { %s389_s12 = smov 0   ;;  %s419_s0 = inlined_call_operand.vmem [shape: f32[16,5], index: 0, kind: input, shape index: {}]   ;;  %s420_s1 = inlined_call_operand.vmem [shape: s32[16,1], index: 1, kind: input, shape index: {}]   ;;  %s421_s2 = inlined_call_operand.vmem [shape: s32[16,4], index: 2, kind: input, shape index: {}]   ;;  %s422_s3 = inlined_call_operand.vmem [shape: f32[2,1,1], index: 3, kind: output, shape index: {}]  }
   0x1 LB: > { %s332_s13 = sadd.s32 4294967295, %s365_s12   ;;  %p336_p0 = scmp.ge.s32.totalorder %s365_s12, 1  ;;  %s365_s12 = sphi %s389_s12, %s13_s12  }
   0x2   : > { %p154_p1 = scmp.lt.s32.totalorder %s365_s12, 3 }
   0x4   : > { %p155_p2 = pnand %p336_p0, %p154_p1 }
   0x5   : > { %p183_p3 = scmp.lt.s32.totalorder (!%p155_p2), %s332_s13, 1 }
   0x6   : > { %158 = sbr.rel (%p155_p2) target bundleno = 302 (0x12e), region = 32 }
   0xb   : > { %v367_v0 = vmov 0   ;;  %s424_s13 = smov (!%p183_p3, %s332_s13), 1  ;;  %vm223_vm0 = vcmask 39936   ;;  %v236_v9 = vlaneseq  ;;  %vm206_vm1 = vcmask 31744  }
   0xc   : > { %354 = vset.pattern.permute.xlu0 %v367_v0  ;;  %s337_s14 = sshll.u32 %s424_s13, 3  ;;  %v368_v19 = vmov 0.0   ;;  %vm251_vm6 = vcmask 7168   ;;  %s197_s26 = scalar_lea.vmem %s422_s3, %s424_s13  ;;  %vm259_vm7 = vcmask 0  }
   0xd   : > { %s186_s17 = scalar_lea.vmem %s419_s0, %s337_s14  ;;  %s190_s20 = scalar_lea.vmem %s420_s1, %s337_s14  ;;  %v237_v12 = vand.u32 127, %v236_v9 }
   0xe   : > { %v198_v1 = vld [vmem:[%s186_s17] sm:$0xff]  ;;  %s194_s23 = scalar_lea.vmem %s421_s2, %s337_s14 }
   0xf   : > { %v224_v2 = vsel %vm223_vm0, %v198_v1, -inf  ;;  %v199_v3 = vld [vmem:[%s190_s20] sm:$0xff] }
  0x10   : > { %225 = vmax.xlane.f32.xlu0 %v224_v2  ;;  %v200_v10 = vld [vmem:[%s194_s23] sm:$0xff]  ;;  %vm245_vm4 = vcmp.ge.s32.totalorder %v199_v3, 0 }
  0x11   : > { %v341_v34 = vsel %vm245_vm4, 1.0, %v368_v19 }
  0x24   : > { %202 = vperm.xlu0 %354, %v199_v3  }
  0x83   : > { %v226_v4 = vpop.xlane.xlu0 %225 }
  0x84   : > { %v227_v5 = vsub.f32 %v198_v1, %v226_v4 }
  0x86   : > { %v228_v6 = vmul.f32 1.442695, %v227_v5 }
  0x88   : > { %355 = vpow2.f32 %v228_v6 }
  0x8e   : > { %v356_v7 = vpop.eup %355 }
  0x8f   : > { %v230_v8 = vsel %vm223_vm0, %v356_v7, 0.0 }
  0x90   : > { %231 = vadd.xlane.f32.xlu1 %v230_v8 }
  0x96   : > { %v203_v11 = vpop.permute.xlu0 %202 }
  0x97   : > { %vm204_vm2 = vcmp.ne.s32.totalorder %v200_v10, %v203_v11  ;;  %vm238_vm3 = vcmp.eq.s32.totalorder %v237_v12, %v203_v11 }
  0x98   : > { %v205_v13 = vsel %vm204_vm2, 1, %v367_v0  ;;  %v340_v20 = vsel %vm238_vm3, 1.0, %v368_v19 }
  0x99   : > { %v207_v14 = vsel %vm206_vm1, %v205_v13, 0  ;;  %v241_v21 = vmul.f32 %v340_v20, %v198_v1 }
  0x9a   : > { %v209_v15 = vshrl.u32 %v207_v14, 16  ;;  %v208_v16 = vand.u32 65535, %v207_v14 }
  0x9b   : > { %v242_v22 = vsel %vm223_vm0, %v241_v21, 0.0 }
  0x9c   : > { %v211_v17 = vcvt.s32.f32 %v209_v15  ;;  %v210_v18 = vcvt.s32.f32 %v208_v16 }
  0x9e   : > { %214 = vadd.xlane.f32.xlu1 %v211_v17  ;;  %212 = vadd.xlane.f32.xlu2 %v210_v18 }
  0xa6   : > { %243 = vadd.xlane.f32.xlu2 %v242_v22 }
 0x103   : > { %v232_v23 = vpop.xlane.xlu1 %231 }
 0x104   : > { %357 = vlog2.f32 %v232_v23 }
 0x10a   : > { %v358_v24 = vpop.eup %357 }
 0x10b   : > { %v234_v28 = vmul.f32 0.6931472, %v358_v24 }
 0x10d   : > { %v235_v32 = vadd.f32 %v234_v28, %v226_v4 }
 0x111   : > { %v215_v25 = vpop.xlane.xlu1 %214  ;;  %v213_v26 = vpop.xlane.xlu2 %212 }
 0x112   : > { %v217_v27 = vcvt.f32.s32 %v215_v25  ;;  %v216_v30 = vcvt.f32.s32 %v213_v26 }
 0x114   : > { %v218_v29 = vshll.u32 %v217_v27, 16 }
 0x116   : > { %v219_v31 = vadd.s32 %v218_v29, %v216_v30 }
 0x118   : > { %vm220_vm5 = vcmp.gt.s32.totalorder %v219_v31, 1 }
 0x119   : > { %v221_v33 = vsel %vm220_vm5, %v219_v31, 1  ;;  %v244_v35 = vpop.xlane.xlu2 %243 }
 0x11a   : > { %v248_v36 = vsub.f32 %v235_v32, %v244_v35  ;;  %v222_v37 = vcvt.s32.f32 %v221_v33 }
 0x11c   : > { %v249_v38 = vmul.f32 %v341_v34, %v248_v36 }
 0x11e   : > { %v250_v39 = vmul.f32 %v249_v38, %v222_v37 }
 0x120   : > { %v252_v40 = vsel %vm251_vm6, %v250_v39, 0.0 }
 0x121   : > { %v253_v41 = vrot.slane %v252_v40, 4 }
 0x123   : > { %v254_v42 = vadd.f32 %v253_v41, %v252_v40 }
 0x125   : > { %v255_v43 = vrot.slane %v254_v42, 2 }
 0x127   : > { %v256_v44 = vadd.f32 %v255_v43, %v254_v42 }
 0x129   : > { %v257_v45 = vrot.slane %v256_v44, 1 }
 0x12b   : > { %v258_v46 = vadd.f32 %v257_v45, %v256_v44 }
 0x12d   : > { %260 = vst.msk [vmem:[%s197_s26] sm:$0x1] %vm259_vm7, %v258_v46 }
 0x12e PF: > { %s13_s12 = sadd.s32 1, %s365_s12  }
 0x12f   : > { %p10_p4 = scmp.ge.s32.totalorder %s13_s12, 4  }
 0x131   :  { %12 = sbr.rel (!%p10_p4) target bundleno = 1 (0x1), region = 68 }

</bundles_post_ra>
